<compile_context>
chip_gen: v5e
topology: v5e:2x2
jax: 0.10.0
libtpu: 0.0.40
codegen_flags: <defaults>
</compile_context>

<pallas_src>
import numpy as np

import jax
import jax.numpy as jnp
from jax.experimental import pallas as pl
from jax.experimental.pallas import tpu as pltpu


_LANE_GROUP = 384  # lcm(3, 128): every lane row starts on an (x,y,z) boundary


def _point_layout(num_points, batch, max_block_bytes=2 << 20):
    """Decompose the flat per-batch point stream (P*3 floats) into
    (rows, lanes) with lanes = 384, and pick a per-grid-step row tile that is
    a multiple of 8 (or the full row count) and fits the VMEM budget."""
    assert num_points % 128 == 0, "P must be a multiple of 128"
    lanes = _LANE_GROUP
    rows = (num_points * 3) // lanes          # == P // 128
    max_tr = max(1, max_block_bytes // (lanes * 4))
    row_tile = rows
    for cand in range(min(rows, max_tr), 0, -1):
        if rows % cand == 0 and (cand % 8 == 0 or cand == rows):
            row_tile = cand
            break
    # v7x has 2 TensorCores: try to keep >= 2 parallel grid steps.
    if batch * (rows // row_tile) < 2:
        for cand in range(row_tile - 1, 0, -1):
            if rows % cand == 0 and cand % 8 == 0:
                row_tile = cand
                break
    return rows, lanes, row_tile


# ----------------------------------------------------------------------------
# Pallas kernel: the per-point hot path.  One grid step reads one contiguous
# (1, row_tile, 384) block of interleaved points and writes the three composed
# warps as three full-block, lane-dense stores.
# ----------------------------------------------------------------------------
def _triplane_kernel(params_ref, phase_ref, pts_ref, o1_ref, o2_ref, o3_ref):
    """params_ref: SMEM (N, 36).  For batch n and output k in {0,1,2}:
         params[n, 12k : 12k+9]   = row-major 3x3 matrix A_k
         params[n, 12k+9 : 12k+12] = translation b_k
       phase_ref: VMEM (1, lanes) f32, repeating 0,1,2 (coordinate index per
       lane).  pts_ref / o*_ref: VMEM (1, row_tile, lanes) blocks of the flat
       interleaved (x0,y0,z0,x1,y1,z1,...) point stream."""
    n = pl.program_id(0)
    v = pts_ref[0]                                   # (TR, L) f32
    lanes = v.shape[-1]

    ph = phase_ref[...]                              # (1, L)
    is_x = jnp.broadcast_to(ph == 0.0, v.shape)
    is_y = jnp.broadcast_to(ph == 1.0, v.shape)

    # Gather each point's x / y / z onto all three of its lanes.  Static lane
    # rolls run on the XLU; since lanes % 3 == 0, xyz groups never straddle a
    # block edge, so no wrapped value is ever selected.
    r1 = pltpu.roll(v, shift=1, axis=1)              # r1[l] = v[l-1]
    r2 = pltpu.roll(v, shift=2, axis=1)              # r2[l] = v[l-2]
    f1 = pltpu.roll(v, shift=lanes - 1, axis=1)      # f1[l] = v[l+1]
    f2 = pltpu.roll(v, shift=lanes - 2, axis=1)      # f2[l] = v[l+2]
    gx = jnp.where(is_x, v, jnp.where(is_y, r1, r2))
    gy = jnp.where(is_x, f1, jnp.where(is_y, v, r1))
    gz = jnp.where(is_x, f2, jnp.where(is_y, f1, v))

    def coeff(cx, cy, cz):
        # per-lane coefficient selected by the output coordinate index (l % 3)
        return jnp.where(is_x, cx, jnp.where(is_y, cy, cz))

    def emit(k, out_ref):
        p = lambda i: params_ref[n, 12 * k + i]
        c0 = coeff(p(0), p(3), p(6))   # column 0 of A_k
        c1 = coeff(p(1), p(4), p(7))   # column 1
        c2 = coeff(p(2), p(5), p(8))   # column 2
        ct = coeff(p(9), p(10), p(11))  # translation
        out_ref[0] = c0 * gx + c1 * gy + c2 * gz + ct   # one full-block store

    emit(0, o1_ref)
    emit(1, o2_ref)
    emit(2, o3_ref)


def triplane_points(points_flat, packed_params, phase_row, *, row_tile):
    """points_flat: (N, rows, lanes) f32 view of (N, P, 3);
    packed_params: (N, 36) f32; phase_row: (1, lanes) f32.
    Returns the three composed warps, each (N, rows, lanes)."""
    N, rows, lanes = points_flat.shape
    out_sds = jax.ShapeDtypeStruct((N, rows, lanes), jnp.float32)

    blk = pl.BlockSpec((1, row_tile, lanes), lambda n, r, params: (n, r, 0))
    phase_spec = pl.BlockSpec((1, lanes), lambda n, r, params: (0, 0))
    grid_spec = pltpu.PrefetchScalarGridSpec(
        num_scalar_prefetch=1,
        grid=(N, rows // row_tile),
        in_specs=[phase_spec, blk],
        out_specs=[blk, blk, blk],
    )
    block_bytes = row_tile * lanes * 4
    # 1 input + 3 output blocks, double-buffered, plus headroom; safe on v7x.
    vmem_limit = int(min(32 << 20, max(16 << 20, 10 * block_bytes)))

    return pl.pallas_call(
        _triplane_kernel,
        out_shape=(out_sds, out_sds, out_sds),
        grid_spec=grid_spec,
        compiler_params=pltpu.CompilerParams(
            dimension_semantics=("parallel", "parallel"),
            vmem_limit_bytes=vmem_limit,
        ),
    )(packed_params, phase_row, points_flat)


# ----------------------------------------------------------------------------
# Plain-JAX glue: layer parameters, affine pre-composition, distortion.
# ----------------------------------------------------------------------------
def _lift_plane(J, t, axes):
    """Embed a 2x2 affine acting on coordinate pair `axes` into a 3x3 affine."""
    N = J.shape[0]
    i0, i1 = axes
    other = 3 - i0 - i1
    M = jnp.zeros((N, 3, 3), jnp.float32)
    M = M.at[:, i0, i0].set(J[:, 0, 0]).at[:, i0, i1].set(J[:, 0, 1])
    M = M.at[:, i1, i0].set(J[:, 1, 0]).at[:, i1, i1].set(J[:, 1, 1])
    M = M.at[:, other, other].set(1.0)
    b = jnp.zeros((N, 3), jnp.float32)
    b = b.at[:, i0].set(t[:, 0]).at[:, i1].set(t[:, 1])
    return M, b


def compute_distortion(a, b, c):
    """Plain-JAX port of TutteTriplane.compute_distortion (N-sized; a Pallas
    launch here would be pure overhead)."""
    row0 = jnp.stack(
        [b[:, 0, 0] * a[:, 0, 0], b[:, 0, 0] * a[:, 0, 1], b[:, 0, 1]], axis=-1)
    row1 = jnp.stack(
        [c[:, 0, 0] * a[:, 1, 0] + c[:, 0, 1] * b[:, 1, 0] * a[:, 0, 0],
         c[:, 0, 0] * a[:, 1, 1] + c[:, 0, 1] * b[:, 1, 0] * a[:, 0, 1],
         c[:, 0, 1] * b[:, 1, 1]], axis=-1)
    row2 = jnp.stack(
        [c[:, 1, 0] * a[:, 1, 0] + c[:, 1, 1] * b[:, 1, 0] * a[:, 0, 0],
         c[:, 1, 0] * a[:, 1, 1] + c[:, 1, 1] * b[:, 1, 0] * a[:, 0, 1],
         c[:, 1, 1] * b[:, 1, 1]], axis=-1)
    return jnp.stack([row0, row1, row2], axis=1)


def init_params(key, var_dim, num_vertices=8):
    """Deterministic synthetic TutteLayer parameters for the three layers."""
    keys = jax.random.split(key, 2)
    scale = 0.05
    Wj = scale * jax.random.normal(keys[0], (3, var_dim, 4), jnp.float32)
    bj = jnp.tile(jnp.array([1.0, 0.0, 0.0, 1.0], jnp.float32), (3, 1))  # ~identity
    Wt = scale * jax.random.normal(keys[1], (3, var_dim, 2), jnp.float32)
    bt = jnp.zeros((3, 2), jnp.float32)
    theta = jnp.linspace(0.0, 2.0 * np.pi, num_vertices, endpoint=False)
    verts = jnp.stack([jnp.cos(theta), jnp.sin(theta)], axis=-1).astype(jnp.float32)
    return {"Wj": Wj, "bj": bj, "Wt": Wt, "bt": bt, "verts": verts}


def tutte_triplane_forward(params, input_points, var_pred, prefix=""):
    """input_points: (N, P, 3) f32; var_pred: (N, D, 3) f32.
    Returns (new_points3 (N, P, 3), return_dict) mirroring the PyTorch module."""
    N, P, _ = input_points.shape

    # Per-layer synthetic affine TutteLayer params (J_l, t_l) from var_pred.
    Js, ts, new_verts = [], [], []
    for l in range(3):
        var_l = var_pred[:, :, l]                                 # (N, D)
        J = (var_l @ params["Wj"][l] + params["bj"][l]).reshape(N, 2, 2)
        t = var_l @ params["Wt"][l] + params["bt"][l]
        Js.append(J)
        ts.append(t)
        new_verts.append(
            jnp.einsum("vc,ndc->nvd", params["verts"], J) + t[:, None, :])

    # Pre-compose the shuffle+warp chain into one 3x3 affine per stage.
    M1, b1 = _lift_plane(Js[0], ts[0], (0, 1))   # layer1 acts on (x, y)
    M2, b2 = _lift_plane(Js[1], ts[1], (0, 2))   # layer2 acts on (x, z)
    M3, b3 = _lift_plane(Js[2], ts[2], (1, 2))   # layer3 acts on (y, z)
    A1, c1 = M1, b1
    A2 = jnp.einsum("nij,njk->nik", M2, A1)
    c2 = jnp.einsum("nij,nj->ni", M2, c1) + b2
    A3 = jnp.einsum("nij,njk->nik", M3, A2)
    c3 = jnp.einsum("nij,nj->ni", M3, c2) + b3

    packed = jnp.concatenate(
        [A1.reshape(N, 9), c1, A2.reshape(N, 9), c2, A3.reshape(N, 9), c3],
        axis=1).astype(jnp.float32)                               # (N, 36)

    rows, lanes, row_tile = _point_layout(P, N)
    phase_row = jnp.tile(jnp.arange(3, dtype=jnp.float32),
                         lanes // 3).reshape(1, lanes)
    pts_flat = input_points.astype(jnp.float32).reshape(N, rows, lanes)  # bitcast

    o1, o2, o3 = triplane_points(pts_flat, packed, phase_row, row_tile=row_tile)
    new_points1 = o1.reshape(N, P, 3)
    new_points2 = o2.reshape(N, P, 3)
    new_points3 = o3.reshape(N, P, 3)

    pred_points1 = new_points1[:, :, 0:2]
    pred_points2 = jnp.stack([new_points2[:, :, 0], new_points2[:, :, 2]], axis=2)
    pred_points3 = new_points3[:, :, 1:3]

    total_distortion = compute_distortion(Js[0], Js[1], Js[2])

    return_dict = {
        prefix + "pred_points1": new_points1,
        prefix + "new_01_vertices1": new_verts[0],
        prefix + "pred_01_points1": pred_points1,
        prefix + "distortion1": Js[0],
        prefix + "pred_points2": new_points2,
        prefix + "new_12_vertices2": new_verts[1],
        prefix + "pred_12_points2": pred_points2,
        prefix + "distortion2": Js[1],
        prefix + "pred_points3": new_points3,
        prefix + "new_02_vertices2": new_verts[2],
        prefix + "pred_02_points2": pred_points3,
        prefix + "distortion3": Js[2],
        prefix + "distortion": total_distortion,
    }
    return new_points3, return_dict


# ----------------------------------------------------------------------------
# Pure-JAX reference of the same composition (silent sanity check).
# ----------------------------------------------------------------------------
def _ref_forward(points, Js, ts):
    def affine(p2, J, t):
        return jnp.einsum("npc,ndc->npd", p2, J) + t[:, None, :]

    p1 = affine(points[:, :, 0:2], Js[0], ts[0])
    np1 = jnp.concatenate([p1, points[:, :, 2:3]], axis=2)
    p2 = affine(jnp.stack([np1[:, :, 0], np1[:, :, 2]], axis=2), Js[1], ts[1])
    np2 = jnp.stack([p2[:, :, 0], np1[:, :, 1], p2[:, :, 1]], axis=2)
    p3 = affine(np2[:, :, 1:3], Js[2], ts[2])
    np3 = jnp.concatenate([np2[:, :, 0:1], p3], axis=2)
    A = compute_distortion(Js[0], Js[1], Js[2])
    return np1, np2, np3, A


if __name__ == "__main__":
    N, P, D = 2, 1024, 16  # batch, points (multiple of 128), var_pred feat dim
    key = jax.random.PRNGKey(0)
    k_pts, k_var, k_par = jax.random.split(key, 3)

    input_points = jax.random.uniform(
        k_pts, (N, P, 3), jnp.float32, minval=-1.0, maxval=1.0)
    var_pred = jax.random.normal(k_var, (N, D, 3), jnp.float32)
    params = init_params(k_par, D)

    new_points3, out_dict = tutte_triplane_forward(params, input_points, var_pred)
    new_points3 = jax.block_until_ready(new_points3)
    np1_out = jax.block_until_ready(out_dict["pred_points1"])
    np2_out = jax.block_until_ready(out_dict["pred_points2"])
    dist = jax.block_until_ready(out_dict["distortion"])

    # silent sanity check against the pure-JAX reference of the same math
    var_l = [var_pred[:, :, l] for l in range(3)]
    Js = [(var_l[l] @ params["Wj"][l] + params["bj"][l]).reshape(N, 2, 2)
          for l in range(3)]
    ts = [var_l[l] @ params["Wt"][l] + params["bt"][l] for l in range(3)]
    ref_np1, ref_np2, ref_np3, ref_A = _ref_forward(input_points, Js, ts)
    assert np.allclose(np.asarray(np1_out), np.asarray(ref_np1), atol=1e-5)
    assert np.allclose(np.asarray(np2_out), np.asarray(ref_np2), atol=1e-5)
    assert np.allclose(np.asarray(new_points3), np.asarray(ref_np3), atol=1e-5)
    assert np.allclose(np.asarray(dist), np.asarray(ref_A), atol=1e-5)

    print("KERNEL_OK")
</pallas_src>

<mosaic_0001>
module attributes {stable_mosaic.version = 11 : i64} {
  func.func @_triplane_kernel(%arg0: i32, %arg1: i32, %arg2: memref<2x36xf32, #tpu.memory_space<smem>>, %arg3: memref<1x384xf32, #tpu.memory_space<vmem>>, %arg4: memref<1x8x384xf32, #tpu.memory_space<vmem>>, %arg5: memref<1x8x384xf32, #tpu.memory_space<vmem>>, %arg6: memref<1x8x384xf32, #tpu.memory_space<vmem>>, %arg7: memref<1x8x384xf32, #tpu.memory_space<vmem>>) attributes {dimension_semantics = [#tpu.dimension_semantics<parallel>, #tpu.dimension_semantics<parallel>], iteration_bounds = array<i64: 2, 1>, scalar_prefetch = 1 : i64, scratch_operands = 0 : i64, tpu.core_type = #tpu.core_type<tc>, window_params = [{pipeline_mode = #tpu.pipeline_mode<synchronous>, transform_indices = @transform_0, window_bounds = array<i64: 1, 384>}, {transform_indices = @transform_1, window_bounds = array<i64: 1, 8, 384>}, {transform_indices = @transform_2, window_bounds = array<i64: 1, 8, 384>}, {transform_indices = @transform_3, window_bounds = array<i64: 1, 8, 384>}, {transform_indices = @transform_4, window_bounds = array<i64: 1, 8, 384>}]} {
    %c0 = arith.constant 0 : index
    %c0_0 = arith.constant 0 : index
    %c0_1 = arith.constant 0 : index
    %0 = vector.load %arg4[%c0, %c0_0, %c0_1] : memref<1x8x384xf32, #tpu.memory_space<vmem>>, vector<1x8x384xf32>
    %1 = vector.shape_cast %0 : vector<1x8x384xf32> to vector<8x384xf32>
    %c0_2 = arith.constant 0 : index
    %c0_3 = arith.constant 0 : index
    %2 = vector.load %arg3[%c0_2, %c0_3] : memref<1x384xf32, #tpu.memory_space<vmem>>, vector<1x384xf32>
    %cst = arith.constant 0.000000e+00 : f32
    %3 = vector.broadcast %cst : f32 to vector<1x384xf32>
    %4 = arith.cmpf oeq, %2, %3 : vector<1x384xf32>
    %5 = vector.shape_cast %4 : vector<1x384xi1> to vector<1x384xi1>
    %6 = vector.broadcast %5 : vector<1x384xi1> to vector<8x384xi1>
    %cst_4 = arith.constant 1.000000e+00 : f32
    %7 = vector.broadcast %cst_4 : f32 to vector<1x384xf32>
    %8 = arith.cmpf oeq, %2, %7 : vector<1x384xf32>
    %9 = vector.shape_cast %8 : vector<1x384xi1> to vector<1x384xi1>
    %10 = vector.broadcast %9 : vector<1x384xi1> to vector<8x384xi1>
    %c1_i32 = arith.constant 1 : i32
    %11 = tpu.dynamic_rotate %1 by %c1_i32 dim 1 : vector<8x384xf32>, i32 -> vector<8x384xf32>
    %c2_i32 = arith.constant 2 : i32
    %12 = tpu.dynamic_rotate %1 by %c2_i32 dim 1 : vector<8x384xf32>, i32 -> vector<8x384xf32>
    %c383_i32 = arith.constant 383 : i32
    %13 = tpu.dynamic_rotate %1 by %c383_i32 dim 1 : vector<8x384xf32>, i32 -> vector<8x384xf32>
    %c382_i32 = arith.constant 382 : i32
    %14 = tpu.dynamic_rotate %1 by %c382_i32 dim 1 : vector<8x384xf32>, i32 -> vector<8x384xf32>
    %15 = arith.select %10, %11, %12 : vector<8x384xi1>, vector<8x384xf32>
    %16 = arith.select %6, %1, %15 : vector<8x384xi1>, vector<8x384xf32>
    %17 = arith.select %10, %1, %11 : vector<8x384xi1>, vector<8x384xf32>
    %18 = arith.select %6, %13, %17 : vector<8x384xi1>, vector<8x384xf32>
    %19 = arith.select %10, %13, %1 : vector<8x384xi1>, vector<8x384xf32>
    %20 = arith.select %6, %14, %19 : vector<8x384xi1>, vector<8x384xf32>
    %21 = arith.index_cast %arg0 : i32 to index
    %c0_5 = arith.constant 0 : index
    %22 = memref.load %arg2[%21, %c0_5] : memref<2x36xf32, #tpu.memory_space<smem>>
    %23 = arith.index_cast %arg0 : i32 to index
    %c3 = arith.constant 3 : index
    %24 = memref.load %arg2[%23, %c3] : memref<2x36xf32, #tpu.memory_space<smem>>
    %25 = arith.index_cast %arg0 : i32 to index
    %c6 = arith.constant 6 : index
    %26 = memref.load %arg2[%25, %c6] : memref<2x36xf32, #tpu.memory_space<smem>>
    %27 = vector.broadcast %24 : f32 to vector<8x384xf32>
    %28 = vector.broadcast %26 : f32 to vector<8x384xf32>
    %29 = arith.select %10, %27, %28 : vector<8x384xi1>, vector<8x384xf32>
    %30 = vector.broadcast %22 : f32 to vector<8x384xf32>
    %31 = arith.select %6, %30, %29 : vector<8x384xi1>, vector<8x384xf32>
    %32 = arith.index_cast %arg0 : i32 to index
    %c1 = arith.constant 1 : index
    %33 = memref.load %arg2[%32, %c1] : memref<2x36xf32, #tpu.memory_space<smem>>
    %34 = arith.index_cast %arg0 : i32 to index
    %c4 = arith.constant 4 : index
    %35 = memref.load %arg2[%34, %c4] : memref<2x36xf32, #tpu.memory_space<smem>>
    %36 = arith.index_cast %arg0 : i32 to index
    %c7 = arith.constant 7 : index
    %37 = memref.load %arg2[%36, %c7] : memref<2x36xf32, #tpu.memory_space<smem>>
    %38 = vector.broadcast %35 : f32 to vector<8x384xf32>
    %39 = vector.broadcast %37 : f32 to vector<8x384xf32>
    %40 = arith.select %10, %38, %39 : vector<8x384xi1>, vector<8x384xf32>
    %41 = vector.broadcast %33 : f32 to vector<8x384xf32>
    %42 = arith.select %6, %41, %40 : vector<8x384xi1>, vector<8x384xf32>
    %43 = arith.index_cast %arg0 : i32 to index
    %c2 = arith.constant 2 : index
    %44 = memref.load %arg2[%43, %c2] : memref<2x36xf32, #tpu.memory_space<smem>>
    %45 = arith.index_cast %arg0 : i32 to index
    %c5 = arith.constant 5 : index
    %46 = memref.load %arg2[%45, %c5] : memref<2x36xf32, #tpu.memory_space<smem>>
    %47 = arith.index_cast %arg0 : i32 to index
    %c8 = arith.constant 8 : index
    %48 = memref.load %arg2[%47, %c8] : memref<2x36xf32, #tpu.memory_space<smem>>
    %49 = vector.broadcast %46 : f32 to vector<8x384xf32>
    %50 = vector.broadcast %48 : f32 to vector<8x384xf32>
    %51 = arith.select %10, %49, %50 : vector<8x384xi1>, vector<8x384xf32>
    %52 = vector.broadcast %44 : f32 to vector<8x384xf32>
    %53 = arith.select %6, %52, %51 : vector<8x384xi1>, vector<8x384xf32>
    %54 = arith.index_cast %arg0 : i32 to index
    %c9 = arith.constant 9 : index
    %55 = memref.load %arg2[%54, %c9] : memref<2x36xf32, #tpu.memory_space<smem>>
    %56 = arith.index_cast %arg0 : i32 to index
    %c10 = arith.constant 10 : index
    %57 = memref.load %arg2[%56, %c10] : memref<2x36xf32, #tpu.memory_space<smem>>
    %58 = arith.index_cast %arg0 : i32 to index
    %c11 = arith.constant 11 : index
    %59 = memref.load %arg2[%58, %c11] : memref<2x36xf32, #tpu.memory_space<smem>>
    %60 = vector.broadcast %57 : f32 to vector<8x384xf32>
    %61 = vector.broadcast %59 : f32 to vector<8x384xf32>
    %62 = arith.select %10, %60, %61 : vector<8x384xi1>, vector<8x384xf32>
    %63 = vector.broadcast %55 : f32 to vector<8x384xf32>
    %64 = arith.select %6, %63, %62 : vector<8x384xi1>, vector<8x384xf32>
    %65 = arith.mulf %31, %16 : vector<8x384xf32>
    %66 = arith.mulf %42, %18 : vector<8x384xf32>
    %67 = arith.addf %65, %66 : vector<8x384xf32>
    %68 = arith.mulf %53, %20 : vector<8x384xf32>
    %69 = arith.addf %67, %68 : vector<8x384xf32>
    %70 = arith.addf %69, %64 : vector<8x384xf32>
    %c0_6 = arith.constant 0 : index
    %c0_7 = arith.constant 0 : index
    %c0_8 = arith.constant 0 : index
    %71 = vector.load %arg5[%c0_6, %c0_7, %c0_8] : memref<1x8x384xf32, #tpu.memory_space<vmem>>, vector<1x8x384xf32>
    %72 = vector.shape_cast %71 : vector<1x8x384xf32> to vector<8x384xf32>
    %73 = vector.shape_cast %70 : vector<8x384xf32> to vector<1x8x384xf32>
    tpu.vector_store %arg5[%c0_6, %c0_7, %c0_8], %73 {strides = array<i32>} : memref<1x8x384xf32, #tpu.memory_space<vmem>>, vector<1x8x384xf32>,
    %74 = arith.index_cast %arg0 : i32 to index
    %c12 = arith.constant 12 : index
    %75 = memref.load %arg2[%74, %c12] : memref<2x36xf32, #tpu.memory_space<smem>>
    %76 = arith.index_cast %arg0 : i32 to index
    %c15 = arith.constant 15 : index
    %77 = memref.load %arg2[%76, %c15] : memref<2x36xf32, #tpu.memory_space<smem>>
    %78 = arith.index_cast %arg0 : i32 to index
    %c18 = arith.constant 18 : index
    %79 = memref.load %arg2[%78, %c18] : memref<2x36xf32, #tpu.memory_space<smem>>
    %80 = vector.broadcast %77 : f32 to vector<8x384xf32>
    %81 = vector.broadcast %79 : f32 to vector<8x384xf32>
    %82 = arith.select %10, %80, %81 : vector<8x384xi1>, vector<8x384xf32>
    %83 = vector.broadcast %75 : f32 to vector<8x384xf32>
    %84 = arith.select %6, %83, %82 : vector<8x384xi1>, vector<8x384xf32>
    %85 = arith.index_cast %arg0 : i32 to index
    %c13 = arith.constant 13 : index
    %86 = memref.load %arg2[%85, %c13] : memref<2x36xf32, #tpu.memory_space<smem>>
    %87 = arith.index_cast %arg0 : i32 to index
    %c16 = arith.constant 16 : index
    %88 = memref.load %arg2[%87, %c16] : memref<2x36xf32, #tpu.memory_space<smem>>
    %89 = arith.index_cast %arg0 : i32 to index
    %c19 = arith.constant 19 : index
    %90 = memref.load %arg2[%89, %c19] : memref<2x36xf32, #tpu.memory_space<smem>>
    %91 = vector.broadcast %88 : f32 to vector<8x384xf32>
    %92 = vector.broadcast %90 : f32 to vector<8x384xf32>
    %93 = arith.select %10, %91, %92 : vector<8x384xi1>, vector<8x384xf32>
    %94 = vector.broadcast %86 : f32 to vector<8x384xf32>
    %95 = arith.select %6, %94, %93 : vector<8x384xi1>, vector<8x384xf32>
    %96 = arith.index_cast %arg0 : i32 to index
    %c14 = arith.constant 14 : index
    %97 = memref.load %arg2[%96, %c14] : memref<2x36xf32, #tpu.memory_space<smem>>
    %98 = arith.index_cast %arg0 : i32 to index
    %c17 = arith.constant 17 : index
    %99 = memref.load %arg2[%98, %c17] : memref<2x36xf32, #tpu.memory_space<smem>>
    %100 = arith.index_cast %arg0 : i32 to index
    %c20 = arith.constant 20 : index
    %101 = memref.load %arg2[%100, %c20] : memref<2x36xf32, #tpu.memory_space<smem>>
    %102 = vector.broadcast %99 : f32 to vector<8x384xf32>
    %103 = vector.broadcast %101 : f32 to vector<8x384xf32>
    %104 = arith.select %10, %102, %103 : vector<8x384xi1>, vector<8x384xf32>
    %105 = vector.broadcast %97 : f32 to vector<8x384xf32>
    %106 = arith.select %6, %105, %104 : vector<8x384xi1>, vector<8x384xf32>
    %107 = arith.index_cast %arg0 : i32 to index
    %c21 = arith.constant 21 : index
    %108 = memref.load %arg2[%107, %c21] : memref<2x36xf32, #tpu.memory_space<smem>>
    %109 = arith.index_cast %arg0 : i32 to index
    %c22 = arith.constant 22 : index
    %110 = memref.load %arg2[%109, %c22] : memref<2x36xf32, #tpu.memory_space<smem>>
    %111 = arith.index_cast %arg0 : i32 to index
    %c23 = arith.constant 23 : index
    %112 = memref.load %arg2[%111, %c23] : memref<2x36xf32, #tpu.memory_space<smem>>
    %113 = vector.broadcast %110 : f32 to vector<8x384xf32>
    %114 = vector.broadcast %112 : f32 to vector<8x384xf32>
    %115 = arith.select %10, %113, %114 : vector<8x384xi1>, vector<8x384xf32>
    %116 = vector.broadcast %108 : f32 to vector<8x384xf32>
    %117 = arith.select %6, %116, %115 : vector<8x384xi1>, vector<8x384xf32>
    %118 = arith.mulf %84, %16 : vector<8x384xf32>
    %119 = arith.mulf %95, %18 : vector<8x384xf32>
    %120 = arith.addf %118, %119 : vector<8x384xf32>
    %121 = arith.mulf %106, %20 : vector<8x384xf32>
    %122 = arith.addf %120, %121 : vector<8x384xf32>
    %123 = arith.addf %122, %117 : vector<8x384xf32>
    %c0_9 = arith.constant 0 : index
    %c0_10 = arith.constant 0 : index
    %c0_11 = arith.constant 0 : index
    %124 = vector.load %arg6[%c0_9, %c0_10, %c0_11] : memref<1x8x384xf32, #tpu.memory_space<vmem>>, vector<1x8x384xf32>
    %125 = vector.shape_cast %124 : vector<1x8x384xf32> to vector<8x384xf32>
    %126 = vector.shape_cast %123 : vector<8x384xf32> to vector<1x8x384xf32>
    tpu.vector_store %arg6[%c0_9, %c0_10, %c0_11], %126 {strides = array<i32>} : memref<1x8x384xf32, #tpu.memory_space<vmem>>, vector<1x8x384xf32>,
    %127 = arith.index_cast %arg0 : i32 to index
    %c24 = arith.constant 24 : index
    %128 = memref.load %arg2[%127, %c24] : memref<2x36xf32, #tpu.memory_space<smem>>
    %129 = arith.index_cast %arg0 : i32 to index
    %c27 = arith.constant 27 : index
    %130 = memref.load %arg2[%129, %c27] : memref<2x36xf32, #tpu.memory_space<smem>>
    %131 = arith.index_cast %arg0 : i32 to index
    %c30 = arith.constant 30 : index
    %132 = memref.load %arg2[%131, %c30] : memref<2x36xf32, #tpu.memory_space<smem>>
    %133 = vector.broadcast %130 : f32 to vector<8x384xf32>
    %134 = vector.broadcast %132 : f32 to vector<8x384xf32>
    %135 = arith.select %10, %133, %134 : vector<8x384xi1>, vector<8x384xf32>
    %136 = vector.broadcast %128 : f32 to vector<8x384xf32>
    %137 = arith.select %6, %136, %135 : vector<8x384xi1>, vector<8x384xf32>
    %138 = arith.index_cast %arg0 : i32 to index
    %c25 = arith.constant 25 : index
    %139 = memref.load %arg2[%138, %c25] : memref<2x36xf32, #tpu.memory_space<smem>>
    %140 = arith.index_cast %arg0 : i32 to index
    %c28 = arith.constant 28 : index
    %141 = memref.load %arg2[%140, %c28] : memref<2x36xf32, #tpu.memory_space<smem>>
    %142 = arith.index_cast %arg0 : i32 to index
    %c31 = arith.constant 31 : index
    %143 = memref.load %arg2[%142, %c31] : memref<2x36xf32, #tpu.memory_space<smem>>
    %144 = vector.broadcast %141 : f32 to vector<8x384xf32>
    %145 = vector.broadcast %143 : f32 to vector<8x384xf32>
    %146 = arith.select %10, %144, %145 : vector<8x384xi1>, vector<8x384xf32>
    %147 = vector.broadcast %139 : f32 to vector<8x384xf32>
    %148 = arith.select %6, %147, %146 : vector<8x384xi1>, vector<8x384xf32>
    %149 = arith.index_cast %arg0 : i32 to index
    %c26 = arith.constant 26 : index
    %150 = memref.load %arg2[%149, %c26] : memref<2x36xf32, #tpu.memory_space<smem>>
    %151 = arith.index_cast %arg0 : i32 to index
    %c29 = arith.constant 29 : index
    %152 = memref.load %arg2[%151, %c29] : memref<2x36xf32, #tpu.memory_space<smem>>
    %153 = arith.index_cast %arg0 : i32 to index
    %c32 = arith.constant 32 : index
    %154 = memref.load %arg2[%153, %c32] : memref<2x36xf32, #tpu.memory_space<smem>>
    %155 = vector.broadcast %152 : f32 to vector<8x384xf32>
    %156 = vector.broadcast %154 : f32 to vector<8x384xf32>
    %157 = arith.select %10, %155, %156 : vector<8x384xi1>, vector<8x384xf32>
    %158 = vector.broadcast %150 : f32 to vector<8x384xf32>
    %159 = arith.select %6, %158, %157 : vector<8x384xi1>, vector<8x384xf32>
    %160 = arith.index_cast %arg0 : i32 to index
    %c33 = arith.constant 33 : index
    %161 = memref.load %arg2[%160, %c33] : memref<2x36xf32, #tpu.memory_space<smem>>
    %162 = arith.index_cast %arg0 : i32 to index
    %c34 = arith.constant 34 : index
    %163 = memref.load %arg2[%162, %c34] : memref<2x36xf32, #tpu.memory_space<smem>>
    %164 = arith.index_cast %arg0 : i32 to index
    %c35 = arith.constant 35 : index
    %165 = memref.load %arg2[%164, %c35] : memref<2x36xf32, #tpu.memory_space<smem>>
    %166 = vector.broadcast %163 : f32 to vector<8x384xf32>
    %167 = vector.broadcast %165 : f32 to vector<8x384xf32>
    %168 = arith.select %10, %166, %167 : vector<8x384xi1>, vector<8x384xf32>
    %169 = vector.broadcast %161 : f32 to vector<8x384xf32>
    %170 = arith.select %6, %169, %168 : vector<8x384xi1>, vector<8x384xf32>
    %171 = arith.mulf %137, %16 : vector<8x384xf32>
    %172 = arith.mulf %148, %18 : vector<8x384xf32>
    %173 = arith.addf %171, %172 : vector<8x384xf32>
    %174 = arith.mulf %159, %20 : vector<8x384xf32>
    %175 = arith.addf %173, %174 : vector<8x384xf32>
    %176 = arith.addf %175, %170 : vector<8x384xf32>
    %c0_12 = arith.constant 0 : index
    %c0_13 = arith.constant 0 : index
    %c0_14 = arith.constant 0 : index
    %177 = vector.load %arg7[%c0_12, %c0_13, %c0_14] : memref<1x8x384xf32, #tpu.memory_space<vmem>>, vector<1x8x384xf32>
    %178 = vector.shape_cast %177 : vector<1x8x384xf32> to vector<8x384xf32>
    %179 = vector.shape_cast %176 : vector<8x384xf32> to vector<1x8x384xf32>
    tpu.vector_store %arg7[%c0_12, %c0_13, %c0_14], %179 {strides = array<i32>} : memref<1x8x384xf32, #tpu.memory_space<vmem>>, vector<1x8x384xf32>,
    return
  }
  func.func @transform_0(%arg0: i32, %arg1: i32, %arg2: memref<2x36xf32, #tpu.memory_space<smem>>) -> (i32, i32) {
    %c0_i32 = arith.constant 0 : i32
    %c0_i32_0 = arith.constant 0 : i32
    %c0_i32_1 = arith.constant 0 : i32
    return %c0_i32, %c0_i32_0 : i32, i32
  }
  func.func @transform_1(%arg0: i32, %arg1: i32, %arg2: memref<2x36xf32, #tpu.memory_space<smem>>) -> (i32, i32, i32) {
    %c0_i32 = arith.constant 0 : i32
    %c0_i32_0 = arith.constant 0 : i32
    return %arg0, %arg1, %c0_i32 : i32, i32, i32
  }
  func.func @transform_2(%arg0: i32, %arg1: i32, %arg2: memref<2x36xf32, #tpu.memory_space<smem>>) -> (i32, i32, i32) {
    %c0_i32 = arith.constant 0 : i32
    %c0_i32_0 = arith.constant 0 : i32
    return %arg0, %arg1, %c0_i32 : i32, i32, i32
  }
  func.func @transform_3(%arg0: i32, %arg1: i32, %arg2: memref<2x36xf32, #tpu.memory_space<smem>>) -> (i32, i32, i32) {
    %c0_i32 = arith.constant 0 : i32
    %c0_i32_0 = arith.constant 0 : i32
    return %arg0, %arg1, %c0_i32 : i32, i32, i32
  }
  func.func @transform_4(%arg0: i32, %arg1: i32, %arg2: memref<2x36xf32, #tpu.memory_space<smem>>) -> (i32, i32, i32) {
    %c0_i32 = arith.constant 0 : i32
    %c0_i32_0 = arith.constant 0 : i32
    return %arg0, %arg1, %c0_i32 : i32, i32, i32
  }
}

</mosaic_0001>

<bundles_post_ra>
// kernel: tpu_custom_call.1
= control target key start
LH: loop header
LB: loop body
LE: loop exit
PB: predicated region body
PF: predicated region fallthrough
CT: control target
= control target key end

     0   :  { %s1162_s21 = smov [#allocation3]   ;;  %s2021_s0 = inlined_call_operand.hbm [shape: f32[2,36], index: 0, kind: input, shape index: {}]   ;;  %s2022_s1 = inlined_call_operand.hbm [shape: f32[1,384], index: 1, kind: input, shape index: {}]   ;;  %s2023_s2 = inlined_call_operand.hbm [shape: f32[2,8,384], index: 2, kind: input, shape index: {}]   ;;  %s2024_s3 = inlined_call_operand.hbm [shape: f32[2,8,384], index: 3, kind: output, shape index: {0}]   ;;  %s2025_s4 = inlined_call_operand.hbm [shape: f32[2,8,384], index: 4, kind: output, shape index: {1}]   ;;  %s2026_s5 = inlined_call_operand.hbm [shape: f32[2,8,384], index: 5, kind: output, shape index: {2}]  }
   0x1   :  { %2040 = sst [smem:[#allocation32_spill]] %s2022_s1  ;;  %s12_s20 = sshll.u32 %s2021_s0, 4  ;;  %s13_s20 = int_to_ptr.hbm [resolvable:$true] %s12_s20 }
   0x2   :  { %2041 = sst [smem:[#allocation33_spill]] %s2023_s2 }
   0x3   :  { %2042 = sst [smem:[#allocation34_spill]] %s2024_s3 }
   0x4   :  { %15 = dma.hbm_to_smem %s13_s20, 32, %s1162_s21, [#allocation2] }
   0x5   :  { %1120 = dma.done.wait [#allocation2], 32 }
   0x6   :  { %1121 = vsyncadd [#allocation2], 4294967264 }
   0x7   :  { %18 = sfence }
   0x8   :  { %19 = vsyncpa [#allocation5], 0 }
   0x9   :  { %20 = vsyncpa [#allocation8], 0 }
   0xa   :  { %22 = vsyncpa [#allocation8 + $0x1], 0 }
   0xb   :  { %23 = vsyncpa [#allocation6], 0 }
   0xc   :  { %25 = vsyncpa [#allocation6 + $0x1], 0 }
   0xd   :  { %26 = vsyncpa [#allocation11], 0 }
   0xe   :  { %28 = vsyncpa [#allocation11 + $0x1], 0  ;;  %s1202_s22 = smov 0   ;;  %s1204_s23 = smov 0  }
   0xf   :  { %s1206_s24 = smov 0   ;;  %s1208_s0 = smov 0  }
  0x10   :  { %s1210_s25 = smov 0   ;;  %s1212_s26 = smov 0  }
  0x11 LB: > { %2043 = sst [smem:[#allocation18_spill]] %s1140_s22  ;;  %s1233_s27 = sadd.s32 4294967295, %s1160_s26   ;;  %s1160_s26 = sphi %s1212_s26, %s34_s26   ;;  %s1156_s25 = sphi %s1210_s25, %s2094_s25   ;;  %s1152_s0 = sphi %s1208_s0, %s2093_s0   ;;  %s1148_s24 = sphi %s1206_s24, %s2092_s24   ;;  %s1144_s23 = sphi %s1204_s23, %s2091_s23   ;;  %s1140_s22 = sphi %s1202_s22, %s2090_s22  }
  0x12   : > { %2044 = sst [smem:[#allocation19_spill]] %s1144_s23  ;;  %s2027_s28 = sadd.s32 4294967294, %s1160_s26  }
  0x13   : > { %2045 = sst [smem:[#allocation20_spill]] %s1148_s24  ;;  %p89_p0 = scmp.ne.s32.totalorder %s1144_s23, %s1140_s22 }
  0x14   : > { %2046 = sst [smem:[#allocation21_spill]] %s1156_s25  ;;  %p90_p1 = scmp.eq.s32.totalorder %s1233_s27, 0 }
  0x15   : > { %2047 = sst [smem:[#allocation22_spill]] %s1160_s26  ;;  %p115_p2 = scmp.eq.s32.totalorder %s1233_s27, 1 }
  0x16   : > { %p121_p3 = scmp.eq.s32.totalorder %s2027_s28, 1  ;;  %p1244_p4 = por %p90_p1, %p89_p0 }
  0x17   : > { %p833_p5 = scmp.ge.s32.totalorder %s1160_s26, 1  ;;  %p184_p7 = scmp.lt.s32.totalorder %s1160_s26, 3 }
  0x18   : > { %p1249_p6 = por %p121_p3, %p89_p0  ;;  %s2051_s1 = sld [smem:[#allocation32_spill]] }
  0x19   : > { %p1257_p8 = pnand %p833_p5, %p184_p7  ;;  %s1163_s10 = smov [#allocation4]  }
  0x1a   : > { %s2049_s30 = scalar_select %p1249_p6, 1, 0 }
  0x1b   : > { %p863_p10 = pneg %p1257_p8  ;;  %s198_s11 = sshll.u32 %s1163_s10, 4  ;;  %s199_s11 = int_to_ptr.vmem [resolvable:$true] %s198_s11 }
  0x1c   : > { %2050 = sst [smem:[#allocation23_spill]] %s2049_s30  ;;  %s46_s12 = sadd.s32 1, %s1156_s25 }
  0x1d   : > { %p864_p11 = pnand %p863_p10, %p90_p1  ;;  %p48_p12 = scmp.ge.s32.totalorder %s46_s12, 2 }
  0x1e   : > { %s196_s8 = sshll.u32 %s2051_s1, 4  ;;  %s76_s13 = sadd.s32 1, %s1148_s24  ;;  %s197_s8 = int_to_ptr.hbm [resolvable:$true] %s196_s8 }
  0x1f   : > { %866 = dma.hbm_to_vmem [thread:$0]  (!%p864_p11), %s197_s8, 48, %s199_s11, [#allocation5]  }
  0x20   : > { %p83_p13 = scmp.ne.s32.totalorder %s1148_s24, %s1144_s23  ;;  %p84_p0 = scmp.eq.s32.totalorder %s1160_s26, 0 }
  0x21   : > { %s2096_s12 = smov (%p48_p12, %s46_s12), 0  ;;  %p882_p7 = scmp.lt.s32.totalorder %s1160_s26, 2 }
  0x22   : > { %2053 = sst [smem:[#allocation24_spill]] %s2096_s12  ;;  %p85_p3 = por %p84_p0, %p83_p13 }
  0x23   : > { %p1275_p5 = por %p115_p2, %p83_p13  ;;  %s71_s15 = ssub.s32 %s1156_s25, %s2096_s12 }
  0x24   : > { %p74_p9 = scmp.eq.s32.totalorder %s71_s15, 0  ;;  %s209_s16 = sand.u32 1, %s1148_s24  }
  0x25   : > { %s2054_s14 = scalar_select %p1275_p5, 1, 0 }
  0x26   : > { %s845_s17 = smul.u32 24, %s209_s16  ;;  %p868_p10 = pnand %p882_p7, %p85_p3 }
  0x27   : > { %2055 = sst [smem:[#allocation25_spill]] %s2054_s14  ;;  %s846_s19 = smul.u32 24, %s1156_s25 }
  0x28   : > { %s1284_s18 = scalar_select %p74_p9, %s1148_s24, %s76_s13  }
  0x29   : > { %s213_s20 = scalar_lea.vmem [#allocation7], %s845_s17  ;;  %s2057_s2 = sld [smem:[#allocation33_spill]] }
  0x2a   : > { %2056 = sst [smem:[#allocation26_spill]] %s1284_s18  ;;  %s224_s21 = sshll.u32 %s213_s20, 4  ;;  %s225_s21 = int_to_ptr.vmem [resolvable:$true] %s224_s21 }
  0x2b   : > { %s210_s11 = scalar_lea.sflag [#allocation8], %s209_s16 }
  0x2d   : > { %233 = sbr.rel (%p1257_p8) target bundleno = 236 (0xec), region = 28 }
  0x2f   : > { %s220_s8 = scalar_lea.hbm %s2057_s2, %s846_s19 }
  0x30   : > { %s222_s10 = sshll.u32 %s220_s8, 4  ;;  %s223_s10 = int_to_ptr.hbm [resolvable:$true] %s222_s10 }
  0x31   : > { %870 = dma.hbm_to_vmem [thread:$0]  (!%p868_p10), %s223_s10, 384, %s225_s21, %s210_s11  }
  0x32   : > { %1123 = dma.done.wait (%p90_p1), [#allocation5], 48  }
  0x33   : > { %1125 = vsyncadd (%p90_p1), [#allocation5], 4294967248  ;;  %s1297_s13 = sand.u32 1, %s1144_s23  }
  0x34   : > { %2058 = sst [smem:[#allocation27_spill]] %s1297_s13  ;;  %s1300_s15 = smul.u32 24, %s1297_s13 }
  0x35   : > { %s241_s16 = scalar_lea.sflag [#allocation8], %s1297_s13 }
  0x36   : > { %s244_s17 = scalar_lea.vmem [#allocation7], %s1300_s15 }
  0x37   : > { %1127 = dma.done.wait (%p1244_p4), %s241_s16, 384  }
  0x38   : > { %1129 = vsyncadd (%p1244_p4), %s241_s16, 4294966912  ;;  %v1308_v0 = vld [vmem:[%s244_s17 + $0x10] sm:$0xff]  ;;  %v1310_v1 = vld [vmem:[%s244_s17] sm:$0xff]  ;;  %s1164_s9 = smov 1   ;;  %s1165_s19 = smov 2   ;;  %v1168_v4 = vmov 0   ;;  %v306_v7 = vlaneseq }
  0x39   : > { %304 = vrot.lane.b32.xlu1 %v1308_v0, %s1164_s9  ;;  %300 = vrot.lane.b32.xlu0 %v1310_v1, %s1164_s9  ;;  %v1314_v2 = vld [vmem:[%s244_s17 + $0x8] sm:$0xff]  ;;  %s1166_s29 = smov 127   ;;  %s1167_s20 = smov 126   ;;  %v283_v3 = vld [vmem:[#allocation4] sm:$0x7] }
  0x3a   : > { %314 = vrot.lane.b32.xlu2 %v1314_v2, %s1165_s19  ;;  %s1327_s21 = sshll.u32 %s1152_s0, 7  ;;  %vm292_vm0 = vcmp.eq.f32.partialorder %v283_v3, 1.0  ;;  %vm284_vm1 = vcmp.eq.f32.partialorder %v283_v3, 0.0  ;;  %v1407_v16 = vand.u32 127, %v306_v7 }
  0x3b   : > { %s362_s6 = sadd.s32 3, %s1327_s21  ;;  %s364_s7 = sadd.s32 6, %s1327_s21  ;;  %v293_v5 = vsel %vm292_vm0, 1, %v1168_v4  ;;  %v285_v6 = vsel %vm284_vm1, 1, %v1168_v4 }
  0x3c   : > { %s1332_s8 = sld [smem:[#allocation3 + %s1327_s21]]  ;;  %s441_s10 = sadd.s32 12, %s1327_s21  ;;  %v294_v8 = vperm.slane %v293_v5, 0  ;;  %v286_v11 = vperm.slane %v285_v6, 0  ;;  %v295_v14 = vperm.slane %v293_v5, 1  ;;  %v296_v15 = vperm.slane %v293_v5, 2 }
  0x3d   : > { %s1335_s11 = sld [smem:[#allocation3 + %s362_s6]]  ;;  %s443_s16 = sadd.s32 15, %s1327_s21  ;;  %v287_v24 = vperm.slane %v285_v6, 1  ;;  %v288_v27 = vperm.slane %v285_v6, 2  ;;  %vm318_vm6 = vcmp.lt.s32.totalorder %v1407_v16, 2  ;;  %vm308_vm9 = vcmp.lt.s32.totalorder %v1407_v16, 1 }
  0x3e   : > { %s1338_s17 = sld [smem:[#allocation3 + %s364_s7]]  ;;  %s524_s28 = sadd.s32 27, %s1327_s21  ;;  %vm1409_vm2 = vcmp.eq.s32.totalorder %v294_v8, 1  ;;  %vm1436_vm3 = vcmp.eq.s32.totalorder %v286_v11, 1  ;;  %vm1441_vm4 = vcmp.eq.s32.totalorder %v295_v14, 1  ;;  %vm1453_vm5 = vcmp.eq.s32.totalorder %v296_v15, 1 }
  0x3f   : > { %s526_s2 = sadd.s32 30, %s1327_s21  ;;  %s375_s12 = sadd.s32 1, %s1327_s21  ;;  %vm1472_vm7 = vcmp.eq.s32.totalorder %v287_v24, 1  ;;  %vm1487_vm8 = vcmp.eq.s32.totalorder %v288_v27, 1  ;;  %vm328_vm10 = vcmp.lt.s32.totalorder %v1407_v16, 127  ;;  %vm338_vm11 = vcmp.lt.s32.totalorder %v1407_v16, 126 }
  0x40   : > { %s1353_s25 = sld [smem:[#allocation3 + %s524_s28]]  ;;  %s377_s7 = sadd.s32 4, %s1327_s21 }
  0x41   : > { %312 = vrot.lane.b32.xlu1 %v1310_v1, %s1165_s19  ;;  %302 = vrot.lane.b32.xlu0 %v1314_v2, %s1164_s9  ;;  %s445_s9 = sadd.s32 18, %s1327_s21  ;;  %s379_s18 = sadd.s32 7, %s1327_s21 }
  0x42   : > { %316 = vrot.lane.b32.xlu2 %v1308_v0, %s1165_s19  ;;  %s1341_s19 = sld [smem:[#allocation3 + %s441_s10]]  ;;  %s456_s24 = sadd.s32 13, %s1327_s21  ;;  %v371_v22 = vstv %s1332_s8 }
  0x43   : > { %s1347_s1 = sld [smem:[#allocation3 + %s445_s9]]  ;;  %s458_s23 = sadd.s32 16, %s1327_s21  ;;  %v1387_v9 = vstv %s1335_s11 }
  0x44   : > { %s1356_s10 = sld [smem:[#allocation3 + %s526_s2]]  ;;  %s460_s28 = sadd.s32 19, %s1327_s21  ;;  %v1390_v10 = vstv %s1338_s17 }
  0x45   : > { %s1362_s9 = sld [smem:[#allocation3 + %s377_s7]]  ;;  %s537_s30 = sadd.s32 25, %s1327_s21  ;;  %v368_v21 = vsel %vm1409_vm2, %v1387_v9, %v1390_v10  ;;  %v369_v35 = vsel %vm1441_vm4, %v1387_v9, %v1390_v10  ;;  %v370_v38 = vsel %vm1453_vm5, %v1387_v9, %v1390_v10 }
  0x46   : > { %s1368_s26 = sld [smem:[#allocation3 + %s456_s24]]  ;;  %s541_s22 = sadd.s32 31, %s1327_s21  ;;  %v1414_v18 = vstv %s1353_s25  ;;  %v1466_v32 = vsel %vm1436_vm3, %v371_v22, %v368_v21  ;;  %v1511_v44 = vsel %vm1472_vm7, %v371_v22, %v369_v35  ;;  %v1528_v48 = vsel %vm1487_vm8, %v371_v22, %v370_v38 }
  0x47   : > { %s1371_s2 = sld [smem:[#allocation3 + %s458_s23]]  ;;  %s390_s24 = sadd.s32 2, %s1327_s21 }
  0x48   : > { %s1374_s7 = sld [smem:[#allocation3 + %s460_s28]]  ;;  %s392_s14 = sadd.s32 5, %s1327_s21  ;;  %v452_v26 = vstv %s1341_s19 }
  0x49   : > { %324 = vrot.lane.b32.xlu1 %v1314_v2, %s1166_s29  ;;  %322 = vrot.lane.b32.xlu0 %v1310_v1, %s1166_s29  ;;  %s1383_s23 = sld [smem:[#allocation3 + %s541_s22]]  ;;  %s394_s3 = sadd.s32 8, %s1327_s21  ;;  %v1399_v13 = vstv %s1347_s1 }
  0x4a   : > { %326 = vrot.lane.b32.xlu2 %v1308_v0, %s1166_s29  ;;  %s522_s29 = sadd.s32 24, %s1327_s21  ;;  %s407_s28 = sadd.s32 10, %s1327_s21  ;;  %v1417_v19 = vstv %s1356_s10 }
  0x4b   : > { %s1350_s6 = sld [smem:[#allocation3 + %s522_s29]]  ;;  %s471_s17 = sadd.s32 14, %s1327_s21  ;;  %v530_v29 = vsel %vm1409_vm2, %v1414_v18, %v1417_v19  ;;  %v381_v40 = vstv %s1362_s9  ;;  %v531_v50 = vsel %vm1441_vm4, %v1414_v18, %v1417_v19  ;;  %v532_v51 = vsel %vm1453_vm5, %v1414_v18, %v1417_v19 }
  0x4c   : > { %s1365_s29 = sld [smem:[#allocation3 + %s379_s18]]  ;;  %s475_s25 = sadd.s32 20, %s1327_s21  ;;  %v467_v55 = vstv %s1368_s26 }
  0x4d   : > { %s1377_s18 = sld [smem:[#allocation3 + %s537_s30]]  ;;  %s490_s10 = sadd.s32 23, %s1327_s21  ;;  %v462_v42 = vstv %s1371_s2 }
  0x4e   : > { %s1392_s30 = sld [smem:[#allocation3 + %s390_s24]]  ;;  %v463_v43 = vstv %s1374_s7  ;;  %s486_s9 = sadd.s32 21, %s1327_s21 }
  0x4f   : > { %s1401_s22 = sld [smem:[#allocation3 + %s392_s14]]  ;;  %s473_s14 = sadd.s32 17, %s1327_s21  ;;  %v1521_v47 = vstv %s1383_s23  ;;  %v465_v54 = vsel %vm1441_vm4, %v462_v42, %v463_v43  ;;  %v464_v63 = vsel %vm1409_vm2, %v462_v42, %v463_v43  ;;  %v466_v3 = vsel %vm1453_vm5, %v462_v42, %v463_v43 }
  0x50   : > { %s1404_s11 = sld [smem:[#allocation3 + %s394_s3]]  ;;  %s567_s7 = sadd.s32 33, %s1327_s21  ;;  %v1593_v6 = vsel %vm1472_vm7, %v467_v55, %v465_v54  ;;  %v1623_v14 = vsel %vm1436_vm3, %v467_v55, %v464_v63  ;;  %v1627_v15 = vsel %vm1487_vm8, %v467_v55, %v466_v3 }
  0x51   : > { %334 = vrot.lane.b32.xlu1 %v1314_v2, %s1167_s20  ;;  %332 = vrot.lane.b32.xlu0 %v1310_v1, %s1167_s20  ;;  %s1419_s1 = sld [smem:[#allocation3 + %s407_s28]]  ;;  %v533_v30 = vstv %s1350_s6  ;;  %s554_s28 = sadd.s32 29, %s1327_s21 }
  0x52   : > { %336 = vrot.lane.b32.xlu2 %v1308_v0, %s1167_s20  ;;  %s1344_s20 = sld [smem:[#allocation3 + %s443_s16]]  ;;  %v1485_v36 = vsel %vm1436_vm3, %v533_v30, %v530_v29  ;;  %v382_v41 = vstv %s1365_s29  ;;  %s405_s26 = sadd.s32 9, %s1327_s21  ;;  %v1575_v62 = vsel %vm1472_vm7, %v533_v30, %v531_v50  ;;  %v1585_v4 = vsel %vm1487_vm8, %v533_v30, %v532_v51 }
  0x53   : > { %s1359_s16 = sld [smem:[#allocation3 + %s375_s12]]  ;;  %s539_s12 = sadd.s32 28, %s1327_s21  ;;  %v384_v52 = vsel %vm1441_vm4, %v381_v40, %v382_v41  ;;  %v548_v58 = vstv %s1377_s18  ;;  %v383_v59 = vsel %vm1409_vm2, %v381_v40, %v382_v41  ;;  %v385_v60 = vsel %vm1453_vm5, %v381_v40, %v382_v41 }
  0x54   : > { %s1380_s13 = sld [smem:[#allocation3 + %s539_s12]]  ;;  %s409_s12 = sadd.s32 11, %s1327_s21  ;;  %v401_v38 = vstv %s1392_s30 }
  0x55   : > { %s1433_s3 = sld [smem:[#allocation3 + %s409_s12]]  ;;  %s556_s12 = sadd.s32 32, %s1327_s21  ;;  %v396_v18 = vstv %s1401_s22 }
  0x56   : > { %s1445_s8 = sld [smem:[#allocation3 + %s471_s17]]  ;;  %v397_v19 = vstv %s1404_s11  ;;  %s1866_s30 = smul.u32 24, %s1152_s0 }
  0x57   : > { %s1457_s19 = sld [smem:[#allocation3 + %s473_s14]]  ;;  %s569_s14 = sadd.s32 34, %s1327_s21  ;;  %v399_v35 = vsel %vm1441_vm4, %v396_v18, %v397_v19  ;;  %v1655_v41 = vstv %s1419_s1  ;;  %v398_v54 = vsel %vm1409_vm2, %v396_v18, %v397_v19  ;;  %v400_v55 = vsel %vm1453_vm5, %v396_v18, %v397_v19 }
  0x58   : > { %v1396_v12 = vstv %s1344_s20  ;;  %s488_s20 = sadd.s32 22, %s1327_s21  ;;  %s1461_s24 = sld [smem:[#allocation3 + %s475_s25]] }
  0x59   : > { %v449_v23 = vsel %vm1409_vm2, %v1396_v12, %v1399_v13  ;;  %s1480_s6 = sld [smem:[#allocation3 + %s488_s20]]  ;;  %v450_v39 = vsel %vm1441_vm4, %v1396_v12, %v1399_v13  ;;  %s571_s20 = sadd.s32 35, %s1327_s21  ;;  %v451_v45 = vsel %vm1453_vm5, %v1396_v12, %v1399_v13  ;;  %v386_v53 = vstv %s1359_s16 }
  0x5a   : > { %v1470_v33 = vsel %vm1436_vm3, %v452_v26, %v449_v23  ;;  %s1499_s17 = sld [smem:[#allocation3 + %s490_s10]]  ;;  %v1518_v46 = vstv %s1380_s13  ;;  %v1532_v49 = vsel %vm1472_vm7, %v452_v26, %v450_v39  ;;  %s552_s13 = sadd.s32 26, %s1327_s21  ;;  %v1571_v61 = vsel %vm1487_vm8, %v452_v26, %v451_v45 }
  0x5b   : > { %s1506_s25 = sld [smem:[#allocation3 + %s554_s28]]  ;;  %v546_v57 = vsel %vm1441_vm4, %v1518_v46, %v1521_v47  ;;  %v1589_v5 = vsel %vm1472_vm7, %v386_v53, %v384_v52  ;;  %v545_v7 = vsel %vm1409_vm2, %v1518_v46, %v1521_v47  ;;  %v1613_v10 = vsel %vm1436_vm3, %v386_v53, %v383_v59  ;;  %s608_s22 = sand.u32 1, %s1233_s27  }
  0x5c   : > { %s1524_s29 = sld [smem:[#allocation3 + %s556_s12]]  ;;  %v1609_v9 = vsel %vm1472_vm7, %v548_v58, %v546_v57  ;;  %v1617_v11 = vsel %vm1487_vm8, %v386_v53, %v385_v60  ;;  %v547_v21 = vsel %vm1453_vm5, %v1518_v46, %v1521_v47  ;;  %v1637_v22 = vsel %vm1436_vm3, %v548_v58, %v545_v7  ;;  %s644_s1 = scalar_lea.hbm %s2025_s4, %s1866_s30 }
  0x5d   : > { %s1543_s2 = sld [smem:[#allocation3 + %s569_s14]]  ;;  %v477_v23 = vstv %s1457_s19  ;;  %v1658_v42 = vstv %s1433_s3  ;;  %v482_v45 = vstv %s1445_s8  ;;  %v1685_v59 = vsel %vm1487_vm8, %v548_v58, %v547_v21  ;;  %s1881_s3 = scalar_lea.vmem [#allocation10], %s1300_s15 }
  0x5e   : > { %s1552_s23 = sld [smem:[#allocation3 + %s571_s20]]  ;;  %v478_v24 = vstv %s1461_s24  ;;  %v1689_v60 = vsel %vm1472_vm7, %v401_v38, %v399_v35  ;;  %s646_s8 = sshll.u32 %s1881_s3, 4  ;;  %v2081_v28 = vsel %vm1453_vm5, %v1655_v41, %v1658_v42  ;;  %s1912_s8 = int_to_ptr.vmem [resolvable:$true] %s646_s8 }
  0x5f   : > { %s1567_s16 = sld [smem:[#allocation3 + %s486_s9]]  ;;  %v492_v26 = vstv %s1480_s6  ;;  %v480_v43 = vsel %vm1441_vm4, %v477_v23, %v478_v24  ;;  %s661_s28 = scalar_lea.hbm %s2026_s5, %s1866_s30 }
  0x60   : > { %s1581_s18 = sld [smem:[#allocation3 + %s552_s13]]  ;;  %v493_v27 = vstv %s1499_s17  ;;  %v1700_v19 = vsel %vm1472_vm7, %v482_v45, %v480_v43  ;;  %v1720_v43 = vsel %vm1436_vm3, %v401_v38, %v398_v54  ;;  %v413_v54 = vsel %vm1409_vm2, %v1655_v41, %v1658_v42  ;;  %s1914_s20 = sshll.u32 %s644_s1, 4  ;;  %s649_s20 = int_to_ptr.hbm [resolvable:$true] %s1914_s20 }
  0x61   : > { %s1599_s21 = sld [smem:[#allocation3 + %s567_s7]]  ;;  %v558_v29 = vstv %s1506_s25  ;;  %v495_v46 = vsel %vm1441_vm4, %v492_v26, %v493_v27  ;;  %s279_s25 = scalar_lea.vmem [#allocation12], %s1300_s15 }
  0x62   : > { %s1619_s10 = sld [smem:[#allocation3 + %s405_s26]]  ;;  %v559_v30 = vstv %s1524_s29  ;;  %s663_s9 = sshll.u32 %s279_s25, 4  ;;  %s1938_s9 = int_to_ptr.vmem [resolvable:$true] %s663_s9 }
  0x63   : > { %v1649_v39 = vstv %s1543_s2  ;;  %v561_v50 = vsel %vm1441_vm4, %v558_v29, %v559_v30  ;;  %s2079_s17 = sld [smem:[#allocation34_spill]]  ;;  %s1927_s29 = sshll.u32 %s661_s28, 4  ;;  %s666_s29 = int_to_ptr.hbm [resolvable:$true] %s1927_s29 }
  0x64   : > { %v1652_v40 = vstv %s1552_s23  ;;  %s1932_s13 = scalar_lea.vmem [#allocation9], %s1300_s15  ;;  %s1947_s15 = scalar_lea.sflag [#allocation11], %s608_s22 }
  0x65   : > { %v497_v47 = vstv %s1567_s16  ;;  %v576_v52 = vsel %vm1441_vm4, %v1649_v39, %v1652_v40  ;;  %s629_s2 = sshll.u32 %s1932_s13, 4  ;;  %s1026_s26 = sshra.s32 %s649_s20, 4  ;;  %s1942_s2 = int_to_ptr.vmem [resolvable:$true] %s629_s2  ;;  %s1027_s26 = int_to_ptr.hbm [resolvable:$true] %s1026_s26 }
  0x66   : > { %v563_v51 = vstv %s1581_s18  ;;  %v1704_v58 = vsel %vm1472_vm7, %v497_v47, %v495_v46  ;;  %v1724_v46 = vsel %vm1487_vm8, %v401_v38, %v400_v55  ;;  %v479_v55 = vsel %vm1409_vm2, %v477_v23, %v478_v24  ;;  %s1028_s16 = scalar_lea.hbm %s1027_s26, 24  ;;  %p1033_p8 = scmp.lt.s32.totalorder %s1027_s26, %s2025_s4 }
  0x67   : > { %v1675_v53 = vstv %s1599_s21  ;;  %2071 = vst [vmem:[#allocation28_spill] sm:$0xff] %v1704_v58  ;;  %v1708_v21 = vsel %vm1472_vm7, %v563_v51, %v561_v50  ;;  %v496_v58 = vsel %vm1453_vm5, %v492_v26, %v493_v27  ;;  %p1029_p1 = scmp.ne.s32.totalorder %s1027_s26, %s1028_s16 }
  0x68   : > { %v1692_v63 = vstv %s1619_s10  ;;  %v1716_v18 = vsel %vm1472_vm7, %v1675_v53, %v576_v52  ;;  %2073 = vst [vmem:[#allocation30_spill] sm:$0xff] %v1724_v46  ;;  %v560_v46 = vsel %vm1409_vm2, %v558_v29, %v559_v30  ;;  %s1032_s10 = scalar_lea.hbm %s2025_s4, 48 }
  0x69   : > { %2072 = vst [vmem:[#allocation29_spill] sm:$0xff] %v1716_v18  ;;  %v481_v18 = vsel %vm1453_vm5, %v477_v23, %v478_v24  ;;  %v1763_v24 = vsel %vm1436_vm3, %v1692_v63, %v413_v54  ;;  %s627_s14 = scalar_lea.hbm %s2079_s17, %s1866_s30  ;;  %v419_v34 = vsel %vm1487_vm8, %v1692_v63, %v2081_v28  ;;  %p1030_p2 = pnand %p1029_p1, %p1275_p5 }
  0x6a   : > { %2074 = vst [vmem:[#allocation31_spill] sm:$0xff] %v1763_v24  ;;  %s1935_s7 = sshll.u32 %s627_s14, 4  ;;  %p1034_p9 = scmp.lt.s32.totalorder %s1032_s10, %s1028_s16  ;;  %s632_s7 = int_to_ptr.hbm [resolvable:$true] %s1935_s7 }
  0x6b   : > { %p1031_p4 = pneg %p1030_p2 }
  0x6c   : > { %p1035_p11 = por %p1034_p9, %p1033_p8 }
  0x6e   : > { %p1036_p12 = pnand %p1035_p11, %p1031_p4 }
  0x94   : > { %v1422_v20 = vpop.permute.xlu2 %314 }
  0x9c   : > { %v1554_v56 = vpop.permute.xlu2 %316 }
  0x9d   : > { %v1605_v8 = vsel %vm318_vm6, %v1422_v20, %v1554_v56 }
  0xab   : > { %v305_v12 = vpop.permute.xlu1 %304  ;;  %v301_v13 = vpop.permute.xlu0 %300 }
  0xac   : > { %v311_v57 = vsel %vm308_vm9, %v305_v12, %v301_v13 }
  0xad   : > { %v348_v50 = vsel %vm1409_vm2, %v1310_v1, %v311_v57 }
  0xb3   : > { %v313_v3 = vpop.permute.xlu1 %312  ;;  %v303_v7 = vpop.permute.xlu0 %302 }
  0xb4   : > { %v321_v35 = vsel %vm318_vm6, %v1554_v56, %v313_v3  ;;  %v320_v56 = vsel %vm318_vm6, %v313_v3, %v1422_v20  ;;  %v310_v52 = vsel %vm308_vm9, %v301_v13, %v303_v7  ;;  %v309_v38 = vsel %vm308_vm9, %v303_v7, %v305_v12  ;;  %v327_v3 = vpop.permute.xlu2 %326 }
  0xb5   : > { %v494_v20 = vsel %vm1409_vm2, %v492_v26, %v493_v27  ;;  %v342_v13 = vsel %vm1409_vm2, %v311_v57, %v321_v35  ;;  %v562_v12 = vsel %vm1453_vm5, %v558_v29, %v559_v30  ;;  %v343_v7 = vsel %vm1441_vm4, %v310_v52, %v320_v56 }
  0xb6   : > { %v575_v26 = vsel %vm1409_vm2, %v1649_v39, %v1652_v40  ;;  %v344_v27 = vsel %vm1453_vm5, %v309_v38, %v1605_v8  ;;  %v483_v29 = vsel %vm1436_vm3, %v482_v45, %v479_v55  ;;  %v485_v30 = vsel %vm1487_vm8, %v482_v45, %v481_v18 }
  0xb7   : > { %v1779_v57 = vsel %vm1436_vm3, %v497_v47, %v494_v20  ;;  %v345_v35 = vsel %vm1436_vm3, %v1310_v1, %v342_v13  ;;  %v1786_v56 = vsel %vm1487_vm8, %v497_v47, %v496_v58  ;;  %v564_v8 = vsel %vm1436_vm3, %v563_v51, %v560_v46 }
  0xb8   : > { %v1792_v54 = vsel %vm1487_vm8, %v563_v51, %v562_v12  ;;  %v346_v45 = vsel %vm1472_vm7, %v1314_v2, %v343_v7  ;;  %v349_v18 = vsel %vm1441_vm4, %v1314_v2, %v310_v52  ;;  %v1807_v51 = vsel %vm1436_vm3, %v1675_v53, %v575_v26 }
  0xb9   : > { %v347_v58 = vsel %vm1487_vm8, %v1308_v0, %v344_v27  ;;  %v420_v12 = vmul.f32 %v1466_v32, %v345_v35  ;;  %v350_v7 = vsel %vm1453_vm5, %v1308_v0, %v309_v38  ;;  %v501_v23 = vmul.f32 %v1470_v33, %v345_v35 }
  0xba   : > { %v582_v47 = vmul.f32 %v1485_v36, %v345_v35  ;;  %v421_v24 = vmul.f32 %v1511_v44, %v346_v45  ;;  %v502_v33 = vmul.f32 %v1532_v49, %v346_v45  ;;  %v503_v36 = vmul.f32 %v1571_v61, %v347_v58 }
  0xbb   : > { %v325_v55 = vpop.permute.xlu1 %324  ;;  %v323_v20 = vpop.permute.xlu0 %322  ;;  %v584_v35 = vmul.f32 %v1585_v4, %v347_v58 }
  0xbc   : > { %v329_v46 = vsel %vm328_vm10, %v325_v55, %v327_v3  ;;  %v330_v52 = vsel %vm328_vm10, %v323_v20, %v325_v55  ;;  %v331_v13 = vsel %vm328_vm10, %v327_v3, %v323_v20 }
  0xbd   : > { %v352_v26 = vsel %vm1472_vm7, %v329_v46, %v349_v18  ;;  %v351_v27 = vsel %vm1436_vm3, %v330_v52, %v348_v50  ;;  %v353_v3 = vsel %vm1487_vm8, %v331_v13, %v350_v7  ;;  %v422_v50 = vmul.f32 %v1528_v48, %v347_v58 }
  0xbe   : > { %v424_v55 = vmul.f32 %v1589_v5, %v352_v26  ;;  %v505_v32 = vmul.f32 %v1593_v6, %v352_v26  ;;  %v586_v20 = vmul.f32 %v1609_v9, %v352_v26  ;;  %v423_v38 = vmul.f32 %v1613_v10, %v351_v27  ;;  %v337_v10 = vpop.permute.xlu2 %336 }
  0xbf   : > { %v504_v18 = vmul.f32 %v1623_v14, %v351_v27  ;;  %v583_v5 = vmul.f32 %v1575_v62, %v346_v45  ;;  %v355_v6 = vsel %vm1441_vm4, %v329_v46, %v1314_v2  ;;  %v506_v9 = vmul.f32 %v1627_v15, %v353_v3 }
  0xc0   : > { %v427_v14 = vadd.f32 %v424_v55, %v421_v24  ;;  %v354_v44 = vsel %vm1409_vm2, %v330_v52, %v1310_v1  ;;  %v356_v48 = vsel %vm1453_vm5, %v331_v13, %v1308_v0  ;;  %v425_v49 = vmul.f32 %v1617_v11, %v353_v3 }
  0xc1   : > { %v508_v61 = vadd.f32 %v505_v32, %v502_v33  ;;  %v589_v62 = vadd.f32 %v586_v20, %v583_v5  ;;  %v426_v4 = vadd.f32 %v423_v38, %v420_v12  ;;  %v507_v45 = vadd.f32 %v504_v18, %v501_v23  ;;  %v2075_v20 = vld [vmem:[#allocation30_spill] sm:$0xff] }
  0xc2   : > { %v585_v15 = vmul.f32 %v1637_v22, %v351_v27  ;;  %v509_v17 = vadd.f32 %v506_v9, %v503_v36  ;;  %v587_v46 = vmul.f32 %v1685_v59, %v353_v3  ;;  %v428_v27 = vadd.f32 %v425_v49, %v422_v50 }
  0xc3   : > { %v335_v2 = vpop.permute.xlu1 %334  ;;  %v333_v58 = vpop.permute.xlu0 %332  ;;  %v2078_v18 = vsel %vm1453_vm5, %v1649_v39, %v1652_v40  ;;  %v2080_v5 = vsel %vm1441_vm4, %v1655_v41, %v1658_v42 }
  0xc4   : > { %v339_v24 = vsel %vm338_vm11, %v335_v2, %v337_v10  ;;  %v340_v1 = vsel %vm338_vm11, %v333_v58, %v335_v2  ;;  %v341_v0 = vsel %vm338_vm11, %v337_v10, %v333_v58  ;;  %v588_v3 = vadd.f32 %v585_v15, %v582_v47 }
  0xc5   : > { %v358_v11 = vsel %vm1472_vm7, %v339_v24, %v355_v6  ;;  %v357_v23 = vsel %vm1436_vm3, %v340_v1, %v354_v44  ;;  %v359_v22 = vsel %vm1487_vm8, %v341_v0, %v356_v48  ;;  %v581_v50 = vsel %vm1487_vm8, %v1675_v53, %v2078_v18  ;;  %v2082_v6 = vld [vmem:[#allocation31_spill] sm:$0xff] }
  0xc6   : > { %v511_v52 = vmul.f32 %v1700_v19, %v358_v11  ;;  %v592_v16 = vmul.f32 %v1708_v21, %v358_v11  ;;  %v429_v13 = vmul.f32 %v1720_v43, %v357_v23  ;;  %v430_v12 = vmul.f32 %v1689_v60, %v358_v11  ;;  %v2076_v43 = vld [vmem:[#allocation28_spill] sm:$0xff] }
  0xc7   : > { %v510_v7 = vmul.f32 %v483_v29, %v357_v23  ;;  %v512_v25 = vmul.f32 %v485_v30, %v359_v22  ;;  %v591_v26 = vmul.f32 %v564_v8, %v357_v23  ;;  %v431_v59 = vmul.f32 %v2075_v20, %v359_v22  ;;  %v2077_v30 = vld [vmem:[#allocation29_spill] sm:$0xff] }
  0xc8   : > { %v514_v55 = vadd.f32 %v511_v52, %v508_v61  ;;  %v595_v32 = vadd.f32 %v592_v16, %v589_v62  ;;  %v593_v21 = vmul.f32 %v1792_v54, %v359_v22  ;;  %v590_v60 = vadd.f32 %v587_v46, %v584_v35 }
  0xc9   : > { %v513_v19 = vadd.f32 %v510_v7, %v507_v45  ;;  %v515_v38 = vadd.f32 %v512_v25, %v509_v17  ;;  %v432_v47 = vadd.f32 %v429_v13, %v426_v4  ;;  %v433_v54 = vadd.f32 %v430_v12, %v427_v14 }
  0xca   : > { %v517_v29 = vadd.f32 %v514_v55, %v2076_v43  ;;  %v598_v8 = vadd.f32 %v595_v32, %v2077_v30  ;;  %v594_v36 = vadd.f32 %v591_v26, %v588_v3  ;;  %v418_v39 = vsel %vm1472_vm7, %v1692_v63, %v2080_v5 }
  0xcb   : > { %v516_v33 = vadd.f32 %v513_v19, %v1779_v57  ;;  %v434_v40 = vadd.f32 %v431_v59, %v428_v27  ;;  %v596_v53 = vadd.f32 %v593_v21, %v590_v60  ;;  %v518_v57 = vadd.f32 %v515_v38, %v1786_v56 }
  0xcc   : > { %601 = vst [vmem:[%s279_s25 + $0x8] sm:$0xff] %v598_v8  ;;  %v597_v35 = vadd.f32 %v594_v36, %v1807_v51  ;;  %v435_v31 = vadd.f32 %v432_v47, %v2082_v6  ;;  %v436_v37 = vadd.f32 %v433_v54, %v418_v39 }
  0xcd   : > { %519 = vst [vmem:[%s1881_s3] sm:$0xff] %v516_v33  ;;  %v599_v9 = vadd.f32 %v596_v53, %v581_v50  ;;  %v437_v41 = vadd.f32 %v434_v40, %v419_v34 }
  0xce   : > { %520 = vst [vmem:[%s1881_s3 + $0x8] sm:$0xff] %v517_v29 }
  0xcf   : > { %600 = vst [vmem:[%s279_s25] sm:$0xff] %v597_v35 }
  0xd0   : > { %602 = vst [vmem:[%s279_s25 + $0x10] sm:$0xff] %v599_v9 }
  0xd1   : > { %521 = vst [vmem:[%s1881_s3 + $0x10] sm:$0xff] %v518_v57 }
  0xd2   : > { %1039 = shalt.err (!%p1036_p12)
}
  0xd3   : > { %858 = dma.vmem_to_hbm [thread:$0]  (%p1275_p5), %s1912_s8, 384, %s649_s20, %s1947_s15   ;;  %438 = vst [vmem:[%s1932_s13] sm:$0xff] %v435_v31 }
  0xd4   : > { %439 = vst [vmem:[%s1932_s13 + $0x8] sm:$0xff] %v436_v37  ;;  %s1054_s27 = sshra.s32 %s666_s29, 4  ;;  %s1060_s3 = scalar_lea.hbm %s2026_s5, 48  ;;  %s1055_s27 = int_to_ptr.hbm [resolvable:$true] %s1054_s27 }
  0xd5   : > { %s1056_s22 = scalar_lea.hbm %s1055_s27, 24  ;;  %p1061_p7 = scmp.lt.s32.totalorder %s1055_s27, %s2026_s5 }
  0xd6   : > { %p1057_p13 = scmp.ne.s32.totalorder %s1055_s27, %s1056_s22  ;;  %p1062_p10 = scmp.lt.s32.totalorder %s1060_s3, %s1056_s22 }
  0xd8   : > { %p1058_p0 = pnand %p1057_p13, %p1275_p5  ;;  %p1063_p1 = por %p1062_p10, %p1061_p7 }
  0xda   : > { %p1059_p3 = pneg %p1058_p0 }
  0xdc   : > { %p1064_p2 = pnand %p1063_p1, %p1059_p3 }
  0xde   : > { %1067 = shalt.err (!%p1064_p2)
}
  0xdf   : > { %s2084_s8 = sld [smem:[#allocation27_spill]]  ;;  %440 = vst [vmem:[%s1932_s13 + $0x10] sm:$0xff] %v437_v41  ;;  %s1082_s6 = sshra.s32 %s632_s7, 4  ;;  %s1083_s6 = int_to_ptr.hbm [resolvable:$true] %s1082_s6 }
  0xe0   : > { %859 = dma.vmem_to_hbm [thread:$0]  (%p1275_p5), %s1938_s9, 384, %s666_s29, %s1947_s15  }
  0xe1   : > { %s1084_s12 = scalar_lea.hbm %s1083_s6, 24  ;;  %s1088_s20 = scalar_lea.hbm %s2079_s17, 48 }
  0xe2   : > { %p1085_p4 = scmp.ne.s32.totalorder %s1083_s6, %s1084_s12  ;;  %p1089_p11 = scmp.lt.s32.totalorder %s1083_s6, %s2079_s17 }
  0xe3   : > { %p1090_p12 = scmp.lt.s32.totalorder %s1088_s20, %s1084_s12 }
  0xe4   : > { %p1086_p8 = pnand %p1085_p4, %p1275_p5 }
  0xe5   : > { %s604_s28 = scalar_lea.sflag [#allocation6], %s2084_s8  ;;  %p1091_p13 = por %p1090_p12, %p1089_p11 }
  0xe6   : > { %p1087_p9 = pneg %p1086_p8 }
  0xe8   : > { %p1092_p0 = pnand %p1091_p13, %p1087_p9 }
  0xea   : > { %1095 = shalt.err (!%p1092_p0)
}
  0xeb   : > { %857 = dma.vmem_to_hbm [thread:$0]  (%p1275_p5), %s1942_s2, 384, %s632_s7, %s604_s28  }
  0xec PF: > { %s2085_s9 = sld [smem:[#allocation18_spill]] }
  0xed   : > { %s2087_s13 = sld [smem:[#allocation22_spill]] }
  0xf2   : > { %s677_s15 = sand.u32 1, %s2085_s9  }
  0xf3   : > { %p2088_p3 = scmp.ge.s32.totalorder %s2087_s13, 2  ;;  %s678_s18 = scalar_lea.sflag [#allocation6], %s677_s15 }
  0xf5   : > { %p872_p7 = pnand %p2088_p3, %p1249_p6 }
  0xf7   : > { %p873_p10 = pneg %p872_p7 }
  0xf9   : > { %1131 = dma.done.wait (%p873_p10), %s678_s18, 384  }
  0xfa   : > { %1133 = vsyncadd (%p873_p10), %s678_s18, 4294966912  ;;  %s2089_s21 = sadd.s32 4294967294, %s2087_s13  }
  0xfb   : > { %s687_s10 = sand.u32 1, %s2089_s21  }
  0xfc   : > { %s688_s23 = scalar_lea.sflag [#allocation11], %s687_s10 }
  0xfd   : > { %1135 = dma.done.wait (%p873_p10), %s688_s23, 768  }
  0xfe   : > { %1137 = vsyncadd (%p873_p10), %s688_s23, 4294966528  ;;  %s34_s26 = sadd.s32 1, %s2087_s13   ;;  %s2090_s22 = sld [smem:[#allocation19_spill]] }
  0xff   : > { %p31_p5 = scmp.ge.s32.totalorder %s34_s26, 4   ;;  %s2091_s23 = sld [smem:[#allocation20_spill]] }
 0x100   : > { %s2092_s24 = sld [smem:[#allocation26_spill]] }
 0x101   : > { %s2093_s0 = sld [smem:[#allocation21_spill]]  ;;  %33 = sbr.rel (!%p31_p5) target bundleno = 17 (0x11), region = 110 }
 0x102   : > { %s2094_s25 = sld [smem:[#allocation24_spill]] }
 0x106   :  { %704 = vsyncpa [#allocation5], 1 }
 0x107   :  { %706 = vsyncpa [#allocation5 + $0x1], 1 }
 0x108   :  { %707 = vsyncpa [#allocation8], 1 }
 0x109   :  { %709 = vsyncpa [#allocation8 + $0x1], 1 }
 0x10a   :  { %710 = vsyncpa [#allocation6], 1 }
 0x10b   :  { %712 = vsyncpa [#allocation6 + $0x1], 1 }
 0x10c   :  { %713 = vsyncpa [#allocation11], 1 }
 0x10d   :  { %715 = vsyncpa [#allocation11 + $0x1], 1 }

</bundles_post_ra>
